<compile_context>
chip_gen: v7x
topology: tpu7x:2x2x1
jax: 0.10.0
libtpu: 0.0.40
codegen_flags: <defaults>
</compile_context>

<pallas_src>
import math

import jax
import jax.numpy as jnp
from jax.experimental import pallas as pl
from jax.experimental.pallas import tpu as pltpu


def _make_embed_kernel(block_tokens: int, vocab_size: int, scale: float):
    def kernel(ids_ref, table_ref, out_ref):
        ids = ids_ref[...]  # (TT, 1) int32, broadcast against lanes below
        col = jax.lax.broadcasted_iota(
            jnp.int32, (block_tokens, vocab_size), 1
        )
        # One-hot with sqrt(d_model) folded in; padding / OOB ids -> zero row.
        onehot = jnp.where(ids == col, jnp.float32(scale), jnp.float32(0.0))
        out_ref[...] = jnp.dot(
            onehot.astype(table_ref.dtype),
            table_ref[...],
            preferred_element_type=jnp.float32,
        ).astype(out_ref.dtype)

    return kernel


def input_embedding(ids: jax.Array, emb_table: jax.Array, *, block_tokens: int = 256) -> jax.Array:
    """ids: (B, S) int, emb_table: (V, D) -> (B, S, D) = emb_table[ids] * sqrt(D)."""
    B, S = ids.shape
    V, D = emb_table.shape
    n_tokens = B * S

    # Token-block size: sublane-aligned (multiple of 8), no bigger than needed.
    TT = int(block_tokens)
    if n_tokens < TT:
        TT = max(8, ((n_tokens + 7) // 8) * 8)
    n_blocks = pl.cdiv(n_tokens, TT)
    n_padded = n_blocks * TT

    ids_flat = ids.reshape(-1).astype(jnp.int32)
    if n_padded != n_tokens:
        ids_flat = jnp.pad(ids_flat, (0, n_padded - n_tokens))
    ids_col = ids_flat.reshape(n_padded, 1)

    # TODO(synk): if V * D no longer fits VMEM (large vocab), tile over V and
    # accumulate partial one-hot matmuls, or fall back to a coalesced manual
    # make_async_copy row gather with deep (>2) buffering.
    table_bytes = V * D * jnp.dtype(emb_table.dtype).itemsize
    block_bytes = TT * D * 4 + TT * 4  # out block (f32) + ids block (int32)
    vmem_limit = int(
        min(max(table_bytes + 4 * block_bytes + (4 << 20), 32 << 20), 64 << 20)
    )

    kernel = _make_embed_kernel(TT, V, math.sqrt(D))

    out = pl.pallas_call(
        kernel,
        out_shape=jax.ShapeDtypeStruct((n_padded, D), emb_table.dtype),
        grid_spec=pltpu.PrefetchScalarGridSpec(
            num_scalar_prefetch=0,
            grid=(n_blocks,),
            in_specs=[
                pl.BlockSpec((TT, 1), lambda i: (i, 0)),   # token ids (VMEM)
                pl.BlockSpec((V, D), lambda i: (0, 0)),    # resident table
            ],
            out_specs=pl.BlockSpec((TT, D), lambda i: (i, 0)),
        ),
        compiler_params=pltpu.CompilerParams(
            dimension_semantics=("parallel",),
            vmem_limit_bytes=vmem_limit,
        ),
    )(ids_col, emb_table)

    return out[:n_tokens].reshape(B, S, D)


if __name__ == "__main__":
    d_model = 128
    vocab_size = 64

    key = jax.random.PRNGKey(0)
    k_emb, k_ids1, k_ids2 = jax.random.split(key, 3)

    # nn.Embedding default init: N(0, 1)
    emb_table = jax.random.normal(k_emb, (vocab_size, d_model), dtype=jnp.float32)

    # Small case (single block, TT shrinks to an 8-aligned size).
    batch, seq = 2, 8
    ids = jax.random.randint(k_ids1, (batch, seq), 0, vocab_size, dtype=jnp.int32)
    out = jax.block_until_ready(input_embedding(ids, emb_table))
    ref = emb_table[ids] * math.sqrt(d_model)
    assert out.shape == (batch, seq, d_model)
    assert jnp.allclose(out, ref, atol=1e-5, rtol=1e-5)

    # Larger case exercising multiple grid blocks + tail padding.
    batch2, seq2 = 4, 100
    ids2 = jax.random.randint(k_ids2, (batch2, seq2), 0, vocab_size, dtype=jnp.int32)
    out2 = jax.block_until_ready(input_embedding(ids2, emb_table))
    ref2 = emb_table[ids2] * math.sqrt(d_model)
    assert out2.shape == (batch2, seq2, d_model)
    assert jnp.allclose(out2, ref2, atol=1e-5, rtol=1e-5)

    print("KERNEL_OK")
</pallas_src>

<mosaic_0001>
module attributes {stable_mosaic.version = 11 : i64} {
  func.func @kernel(%arg0: i32, %arg1: memref<16x1xi32, #tpu.memory_space<vmem>>, %arg2: memref<64x128xf32, #tpu.memory_space<vmem>>, %arg3: memref<16x128xf32, #tpu.memory_space<vmem>>) attributes {dimension_semantics = [#tpu.dimension_semantics<parallel>], iteration_bounds = array<i64: 1>, scalar_prefetch = 0 : i64, scratch_operands = 0 : i64, tpu.core_type = #tpu.core_type<tc>, window_params = [{transform_indices = @transform_0, window_bounds = array<i64: 16, 1>}, {pipeline_mode = #tpu.pipeline_mode<synchronous>, transform_indices = @transform_1, window_bounds = array<i64: 64, 128>}, {transform_indices = @transform_2, window_bounds = array<i64: 16, 128>}]} {
    %c0 = arith.constant 0 : index
    %c0_0 = arith.constant 0 : index
    %0 = vector.load %arg1[%c0, %c0_0] : memref<16x1xi32, #tpu.memory_space<vmem>>, vector<16x1xi32>
    %1 = tpu.iota {dimensions = array<i32: 1>} : vector<16x64xi32>
    %2 = vector.broadcast %0 : vector<16x1xi32> to vector<16x64xi32>
    %3 = arith.cmpi eq, %2, %1 : vector<16x64xi32>
    %cst = arith.constant 11.3137083 : f32
    %cst_1 = arith.constant 0.000000e+00 : f32
    %4 = vector.broadcast %cst : f32 to vector<16x64xf32>
    %5 = vector.broadcast %cst_1 : f32 to vector<16x64xf32>
    %6 = arith.select %3, %4, %5 : vector<16x64xi1>, vector<16x64xf32>
    %c0_2 = arith.constant 0 : index
    %c0_3 = arith.constant 0 : index
    %7 = vector.load %arg2[%c0_2, %c0_3] : memref<64x128xf32, #tpu.memory_space<vmem>>, vector<64x128xf32>
    %cst_4 = arith.constant dense<0.000000e+00> : vector<16x128xf32>
    %8 = tpu.matmul %6, %7, %cst_4 {dimension_numbers = #tpu.dot_dimension_numbers<[1], [0], [0], [1], [0, 0, 1, 1], [], []>} : vector<16x64xf32>, vector<64x128xf32>, vector<16x128xf32> -> vector<16x128xf32>
    %c0_5 = arith.constant 0 : index
    %c0_6 = arith.constant 0 : index
    %9 = vector.load %arg3[%c0_5, %c0_6] : memref<16x128xf32, #tpu.memory_space<vmem>>, vector<16x128xf32>
    tpu.vector_store %arg3[%c0_5, %c0_6], %8 {strides = array<i32>} : memref<16x128xf32, #tpu.memory_space<vmem>>, vector<16x128xf32>,
    return
  }
  func.func @transform_0(%arg0: i32) -> (i32, i32) {
    %c0_i32 = arith.constant 0 : i32
    %c0_i32_0 = arith.constant 0 : i32
    return %arg0, %c0_i32 : i32, i32
  }
  func.func @transform_1(%arg0: i32) -> (i32, i32) {
    %c0_i32 = arith.constant 0 : i32
    %c0_i32_0 = arith.constant 0 : i32
    %c0_i32_1 = arith.constant 0 : i32
    return %c0_i32, %c0_i32_0 : i32, i32
  }
  func.func @transform_2(%arg0: i32) -> (i32, i32) {
    %c0_i32 = arith.constant 0 : i32
    %c0_i32_0 = arith.constant 0 : i32
    return %arg0, %c0_i32 : i32, i32
  }
}

</mosaic_0001>

<bundles_post_ra>
// kernel: tpu_custom_call.1
= control target key start
LH: loop header
LB: loop body
LE: loop exit
PB: predicated region body
PF: predicated region fallthrough
CT: control target
= control target key end

     0   :  { %7 = vsyncpa [#allocation3], 0  ;;  %s308_s0 = inlined_call_operand.vmem [shape: s32[16,1], index: 0, kind: input, shape index: {}]   ;;  %s309_s1 = inlined_call_operand.hbm [shape: f32[64,128], index: 1, kind: input, shape index: {}]   ;;  %s310_s2 = inlined_call_operand.hbm [shape: f32[16,128], index: 2, kind: output, shape index: {}]  }
   0x1   :  { %8 = vsyncpa [#allocation4], 0  ;;  %s251_s9 = smov [#allocation2]   ;;  %s203_s13 = scalar_lea.hbm %s309_s1, 1024 }
   0x2   :  { %s16_s10 = sshll.u32 %s251_s9, 4  ;;  %p204_p0 = scmp.ne.s32.totalorder %s309_s1, %s203_s13  ;;  %s17_s10 = int_to_ptr.vmem [resolvable:$true] %s16_s10 }
   0x3   :  { %p207_p1 = scmp.lt.u32.totalorder %s203_s13, %s309_s1 }
   0x5   :  { %p209_p2 = pnand %p207_p1, %p204_p0 }
   0x7   :  { %212 = shalt.err (!%p209_p2)
}
   0x8   :  { %s213_s18 = scalar_lea.vmem %s17_s10, 1024  ;;  %p218_p4 = scmp.lt.s32.totalorder %s17_s10, %s17_s10 }
   0x9   :  { %p214_p3 = scmp.ne.s32.totalorder %s17_s10, %s213_s18  ;;  %p219_p5 = scmp.lt.s32.totalorder %s213_s18, %s213_s18 }
   0xb   :  { %p220_p6 = por %p219_p5, %p218_p4 }
   0xd   :  { %p221_p7 = pnand %p220_p6, %p214_p3 }
   0xf   :  { %224 = shalt.err (!%p221_p7)
}
  0x10   :  { %s252_s19 = smov 128   ;;  %s253_s20 = smov 8  }
  0x11   :  { %22 = dma.hbm_to_vmem [thread:$0]  %s309_s1, 1024, %s17_s10, [#allocation3], %s252_s19, %s252_s19, %s253_s20  }
  0x12   :  { %247 = dma.done.wait [#allocation3], 1024  }
  0x13   :  { %248 = vsyncadd [#allocation3], 4294966272  ;;  %v254_v0 = vmov 0   ;;  %v26_v1 = vld [vmem:[%s308_s0] sm:$0xff]  ;;  %v41_v3 = vld [vmem:[#allocation2 + $0x8] sm:$0xff]  ;;  %v28_v15 = vlaneseq  ;;  %vm48_vm0 = vcmask 523264  }
  0x14   :  { %202 = vset.pattern.permute.xlu0 %v254_v0  ;;  %v40_v2 = vld [vmem:[#allocation2] sm:$0xff]  ;;  %v42_v4 = vld [vmem:[#allocation2 + $0x10] sm:$0xff]  ;;  %v43_v5 = vld [vmem:[#allocation2 + $0x18] sm:$0xff]  ;;  %v255_v18 = vmov 0.0  }
  0x15   :  { %31 = vperm.xlu0 %202, %v26_v1   ;;  %v27_v6 = vld [vmem:[%s308_s0 + $0x8] sm:$0xff]  ;;  %v180_v7 = vpack.c.bf16 %v41_v3, %v40_v2  ;;  %v184_v8 = vpack.c.bf16 %v43_v5, %v42_v4  ;;  %v44_v9 = vld [vmem:[#allocation2 + $0x20] sm:$0xff]  ;;  %v46_v12 = vld [vmem:[#allocation2 + $0x30] sm:$0xff]  ;;  %v29_v16 = vand.u32 127, %v28_v15  ;;  %s256_s0 = smov [#allocation5]  }
  0x16   :  { %v45_v10 = vld [vmem:[#allocation2 + $0x28] sm:$0xff]  ;;  %v47_v13 = vld [vmem:[#allocation2 + $0x38] sm:$0xff]  ;;  %s137_s1 = sshll.u32 %s256_s0, 4  ;;  %s138_s1 = int_to_ptr.vmem [resolvable:$true] %s137_s1 }
  0x17   :  { %181 = vmatprep.subr.bf16.mxu0 %v180_v7  ;;  %v188_v11 = vpack.c.bf16 %v45_v10, %v44_v9  ;;  %v192_v14 = vpack.c.bf16 %v47_v13, %v46_v12  ;;  %s225_s27 = scalar_lea.vmem %s138_s1, 256  ;;  %p230_p9 = scmp.lt.s32.totalorder %s138_s1, %s138_s1 }
  0x18   :  { %183 = vmatpush3.bf16.msra.mxu0 %v180_v7  ;;  %p226_p8 = scmp.ne.s32.totalorder %s138_s1, %s225_s27  ;;  %p231_p10 = scmp.lt.s32.totalorder %s225_s27, %s225_s27 }
  0x19   :  { %34 = vperm.xlu0 %202, %v27_v6   ;;  %185 = vmatprep.subr.bf16.mxu0 %v184_v8 }
  0x1a   :  { %p232_p11 = por %p231_p10, %p230_p9 }
  0x1c   :  { %187 = vmatpush3.bf16.msra.mxu0 %v184_v8  ;;  %p233_p12 = pnand %p232_p11, %p226_p8 }
  0x1d   :  { %189 = vmatprep.subr.bf16.mxu0 %v188_v11 }
  0x20   :  { %191 = vmatpush3.bf16.msra.mxu0 %v188_v11 }
  0x21   :  { %193 = vmatprep.subr.bf16.mxu0 %v192_v14 }
  0x24   :  { %195 = vmatpush3.bf16.msra.mxu0 %v192_v14 }
  0x94   :  { %v32_v17 = vpop.permute.xlu0 %31 }
  0x95   :  { %vm36_vm1 = vcmp.eq.s32.totalorder %v32_v17, %v29_v16 }
  0x96   :  { %v38_v19 = vsel %vm36_vm1, 11.313708, %v255_v18 }
  0x97   :  { %177 = vmatprep.mubr.msk.f32.mxu0 %vm48_vm0, %v38_v19 }
  0x98   :  { %v35_v20 = vpop.permute.xlu0 %34 }
  0x99   :  { %vm37_vm2 = vcmp.eq.s32.totalorder %v35_v20, %v29_v16 }
  0x9a   :  { %v39_v21 = vsel %vm37_vm2, 11.313708, %v255_v18 }
  0x9b   :  { %178 = vmatmul.mubr.msk.f32.vlgmr.msra.gmra.mrb[0].mxu0 %vm48_vm0, %v39_v21 }
 0x16e   :  { %v179_v22 = vpop.f32.mrb[0].mxu0 }
 0x16f   :  { %131 = vst [vmem:[#allocation5 + $0x8] sm:$0xff] %v179_v22  ;;  %v121_v23 = vpop.f32.mrb[1].mxu0 }
 0x170   :  { %130 = vst [vmem:[#allocation5] sm:$0xff] %v121_v23 }
 0x171   :  { %236 = shalt.err (!%p233_p12)
}
 0x172   :  { %s237_s30 = scalar_lea.hbm %s310_s2, 256 }
 0x173   :  { %p238_p13 = scmp.ne.s32.totalorder %s310_s2, %s237_s30  ;;  %p241_p0 = scmp.lt.u32.totalorder %s237_s30, %s310_s2 }
 0x175   :  { %p243_p1 = pnand %p241_p0, %p238_p13 }
 0x177   :  { %246 = shalt.err (!%p243_p1)
}
 0x178   :  { %143 = dma.vmem_to_hbm [thread:$0]  %s138_s1, 256, %s310_s2, [#allocation4], %s252_s19, %s252_s19, %s253_s20  }
 0x179   :  { %249 = dma.done.wait [#allocation4], 256  }
 0x17a   :  { %250 = vsyncadd [#allocation4], 4294967040 }
 0x17b   :  { %147 = vsyncpa [#allocation3], 1 }
 0x17c   :  { %148 = vsyncpa [#allocation4], 1 }

</bundles_post_ra>
